<compile_context>
chip_gen: v7x
topology: tpu7x:2x2x1
jax: 0.10.0
libtpu: 0.0.40
codegen_flags: <defaults>
</compile_context>

<pallas_src>
import functools

import jax
import jax.numpy as jnp
from jax.experimental import pallas as pl
from jax.experimental.pallas import tpu as pltpu

_LANE = 128  # padded lane width for all weight / activation columns


def _graph_classifier_kernel(pooling_op, h_in, x_ref, w_ref, b_ref, o_ref):
    """Fused pool + 4-layer MLP for one batch-tile of graphs.

    x_ref: [TB, N, h_in]   node features for TB graphs (h_in = feature dim,
                           padded to a multiple of 8)
    w_ref: [4, P, P]       zero-padded weight slab (layer l = w_ref[l])
    b_ref: [4, 1, P]       zero-padded bias slab
    o_ref: [TB, P]         lane-dense logits (real classes in the first lanes)
    """
    xb = x_ref[...]
    if xb.dtype != jnp.float32:
        xb = xb.astype(jnp.float32)

    # --- pooling over the node axis (per graph) ---
    if pooling_op == "mean":
        pooled = jnp.mean(xb, axis=1)                     # [TB, h_in]
    elif pooling_op == "max":
        pooled = jnp.max(xb, axis=1)                      # [TB, h_in]
    elif pooling_op == "last":
        pooled = xb[:, xb.shape[1] - 1, :]                # [TB, h_in]
    else:
        raise NotImplementedError("not implemented")

    # --- MLP head: Linear -> ReLU -> (Dropout=id) x3, then final Linear ---
    # Layer 1 uses only the first h_in rows of the padded weight slab; the
    # remaining (padded) rows/columns are zero, so padding never leaks.
    w1 = w_ref[0][:h_in, :]                               # [h_in, P]
    h = jnp.dot(pooled, w1, preferred_element_type=jnp.float32)
    h = jnp.maximum(h + b_ref[0], 0.0)

    h = jnp.dot(h, w_ref[1], preferred_element_type=jnp.float32)
    h = jnp.maximum(h + b_ref[1], 0.0)

    h = jnp.dot(h, w_ref[2], preferred_element_type=jnp.float32)
    h = jnp.maximum(h + b_ref[2], 0.0)

    logits = jnp.dot(h, w_ref[3], preferred_element_type=jnp.float32)
    logits = logits + b_ref[3]

    o_ref[...] = logits.astype(o_ref.dtype)


def pack_params(params, hidden_dim, num_classes, pad=_LANE):
    """Packs w1..w4 / b1..b4 into zero-padded [4,P,P] / [4,1,P] slabs."""
    h2 = hidden_dim // 2
    shapes = [(hidden_dim, h2), (h2, h2), (h2, h2), (h2, num_classes)]
    assert max(hidden_dim, h2, num_classes) <= pad, "demo assumes dims <= 128"
    ws, bs = [], []
    for i, (fi, fo) in enumerate(shapes, start=1):
        w = params[f"w{i}"]                               # [fi, fo]
        b = params[f"b{i}"]                               # [1, fo]
        ws.append(jnp.zeros((pad, pad), jnp.float32).at[:fi, :fo].set(w))
        bs.append(jnp.zeros((1, pad), jnp.float32).at[:, :fo].set(b))
    return jnp.stack(ws), jnp.stack(bs)                   # [4,P,P], [4,1,P]


def graph_classifier_forward(x, params, pooling_op, *, tb=8):
    """Runs the fused GraphClassifier forward pass.

    Args:
      x: [B, num_nodes, H] batched node features, or [num_nodes, H] for a
         single graph (matching the original per-graph module).
      params: dict with w1..w4 ([in, out]) and b1..b4 ([1, out]).
      pooling_op: one of "mean", "max", "last".
      tb: graphs per grid step (multiple of 8).

    Returns:
      [B, num_classes] logits (or [num_classes] for a single-graph input).
    """
    single = x.ndim == 2
    if single:
        x = x[None]
    B, N, H = x.shape
    hidden_dim = params["w1"].shape[0]
    num_classes = params["w4"].shape[1]
    P = _LANE

    # Pad the feature dim up to a multiple of 8 (sublane granularity for the
    # layer-1 weight slice); usually a no-op.
    Hs = ((H + 7) // 8) * 8
    if Hs != H:
        x = jnp.pad(x, ((0, 0), (0, 0), (0, Hs - H)))

    # Pad the batch up to a multiple of the batch tile.
    Bp = ((B + tb - 1) // tb) * tb
    if Bp != B:
        x = jnp.pad(x, ((0, Bp - B), (0, 0), (0, 0)))

    w_slab, b_slab = pack_params(params, hidden_dim, num_classes, P)

    out = pl.pallas_call(
        functools.partial(_graph_classifier_kernel, pooling_op, Hs),
        out_shape=jax.ShapeDtypeStruct((Bp, P), jnp.float32),
        grid=(Bp // tb,),
        in_specs=[
            pl.BlockSpec((tb, N, Hs), lambda i: (i, 0, 0)),   # node features
            pl.BlockSpec((4, P, P), lambda i: (0, 0, 0)),     # weight slab
            pl.BlockSpec((4, 1, P), lambda i: (0, 0, 0)),     # bias slab
        ],
        out_specs=pl.BlockSpec((tb, P), lambda i: (i, 0)),
        compiler_params=pltpu.CompilerParams(
            dimension_semantics=("parallel",)),               # 2 TCs on v7x
    )(x, w_slab, b_slab)

    logits = out[:B, :num_classes]
    return logits[0] if single else logits


def init_params(key, hidden_dim, num_classes):
    """Deterministic synthetic parameters (shapes from GraphClassifier.__init__)."""
    h2 = hidden_dim // 2
    keys = jax.random.split(key, 8)

    def linear(kw, kb, fan_in, fan_out):
        bound = 1.0 / jnp.sqrt(fan_in)
        w = jax.random.uniform(kw, (fan_in, fan_out), jnp.float32, -bound, bound)
        b = jax.random.uniform(kb, (1, fan_out), jnp.float32, -bound, bound)
        return w, b

    w1, b1 = linear(keys[0], keys[1], hidden_dim, h2)
    w2, b2 = linear(keys[2], keys[3], h2, h2)
    w3, b3 = linear(keys[4], keys[5], h2, h2)
    w4, b4 = linear(keys[6], keys[7], h2, num_classes)
    return dict(w1=w1, b1=b1, w2=w2, b2=b2, w3=w3, b3=b3, w4=w4, b4=b4)


def reference_forward(x, params, pooling_op):
    """Pure-JAX reference (batched) for correctness checking."""
    if pooling_op == "mean":
        pooled = x.mean(axis=-2)
    elif pooling_op == "max":
        pooled = x.max(axis=-2)
    elif pooling_op == "last":
        pooled = x[..., -1, :]
    else:
        raise NotImplementedError
    h = jnp.maximum(pooled @ params["w1"] + params["b1"], 0.0)
    h = jnp.maximum(h @ params["w2"] + params["b2"], 0.0)
    h = jnp.maximum(h @ params["w3"] + params["b3"], 0.0)
    return h @ params["w4"] + params["b4"]


if __name__ == "__main__":
    key = jax.random.PRNGKey(0)
    k_x, k_p = jax.random.split(key)

    batch = 16          # graphs per call
    num_nodes = 8
    hidden_dim = 32
    num_classes = 8

    x = jax.random.normal(k_x, (batch, num_nodes, hidden_dim), jnp.float32)
    params = init_params(k_p, hidden_dim, num_classes)

    ok = True
    for pooling_op in ("mean", "max", "last"):
        logits = graph_classifier_forward(x, params, pooling_op, tb=8)
        logits = jax.block_until_ready(logits)
        ref = reference_forward(x, params, pooling_op)
        if not jnp.allclose(logits, ref, atol=1e-5, rtol=1e-5):
            ok = False

    # Single-graph path: identical semantics to the original module forward.
    logits1 = graph_classifier_forward(x[0], params, "mean")
    logits1 = jax.block_until_ready(logits1)
    ref1 = reference_forward(x[:1], params, "mean")[0]
    if not jnp.allclose(logits1, ref1, atol=1e-5, rtol=1e-5):
        ok = False

    if ok:
        print("KERNEL_OK")
</pallas_src>

<mosaic_0001>
module attributes {stable_mosaic.version = 11 : i64} {
  func.func @_graph_classifier_kernel(%arg0: i32, %arg1: memref<8x8x32xf32, #tpu.memory_space<vmem>>, %arg2: memref<4x128x128xf32, #tpu.memory_space<vmem>>, %arg3: memref<4x1x128xf32, #tpu.memory_space<vmem>>, %arg4: memref<8x128xf32, #tpu.memory_space<vmem>>) attributes {dimension_semantics = [#tpu.dimension_semantics<parallel>], iteration_bounds = array<i64: 2>, scalar_prefetch = 0 : i64, scratch_operands = 0 : i64, tpu.core_type = #tpu.core_type<tc>, window_params = [{transform_indices = @transform_0, window_bounds = array<i64: 8, 8, 32>}, {pipeline_mode = #tpu.pipeline_mode<synchronous>, transform_indices = @transform_1, window_bounds = array<i64: 4, 128, 128>}, {pipeline_mode = #tpu.pipeline_mode<synchronous>, transform_indices = @transform_2, window_bounds = array<i64: 4, 1, 128>}, {transform_indices = @transform_3, window_bounds = array<i64: 8, 128>}]} {
    %c0 = arith.constant 0 : index
    %c0_0 = arith.constant 0 : index
    %c0_1 = arith.constant 0 : index
    %0 = vector.load %arg1[%c0, %c0_0, %c0_1] : memref<8x8x32xf32, #tpu.memory_space<vmem>>, vector<8x8x32xf32>
    %cst = arith.constant dense<0.000000e+00> : vector<8x32xf32>
    %1 = vector.multi_reduction <add>, %0, %cst [1] : vector<8x8x32xf32> to vector<8x32xf32>
    %cst_2 = arith.constant 8.000000e+00 : f32
    %2 = vector.broadcast %cst_2 : f32 to vector<8x32xf32>
    %3 = arith.divf %1, %2 : vector<8x32xf32>
    %c0_3 = arith.constant 0 : index
    %c0_4 = arith.constant 0 : index
    %c0_5 = arith.constant 0 : index
    %4 = vector.load %arg2[%c0_3, %c0_4, %c0_5] : memref<4x128x128xf32, #tpu.memory_space<vmem>>, vector<1x128x128xf32>
    %5 = vector.shape_cast %4 : vector<1x128x128xf32> to vector<128x128xf32>
    %6 = vector.extract_strided_slice %5 {offsets = [0, 0], sizes = [32, 128], strides = [1, 1]} : vector<128x128xf32> to vector<32x128xf32>
    %cst_6 = arith.constant dense<0.000000e+00> : vector<8x128xf32>
    %7 = tpu.matmul %3, %6, %cst_6 {dimension_numbers = #tpu.dot_dimension_numbers<[1], [0], [0], [1], [0, 0, 1, 1], [], []>} : vector<8x32xf32>, vector<32x128xf32>, vector<8x128xf32> -> vector<8x128xf32>
    %c0_7 = arith.constant 0 : index
    %c0_8 = arith.constant 0 : index
    %c0_9 = arith.constant 0 : index
    %8 = vector.load %arg3[%c0_7, %c0_8, %c0_9] : memref<4x1x128xf32, #tpu.memory_space<vmem>>, vector<1x1x128xf32>
    %9 = vector.shape_cast %8 : vector<1x1x128xf32> to vector<1x128xf32>
    %10 = vector.broadcast %9 : vector<1x128xf32> to vector<8x128xf32>
    %11 = arith.addf %7, %10 : vector<8x128xf32>
    %cst_10 = arith.constant 0.000000e+00 : f32
    %12 = vector.broadcast %cst_10 : f32 to vector<8x128xf32>
    %13 = arith.maximumf %11, %12 : vector<8x128xf32>
    %c1 = arith.constant 1 : index
    %c0_11 = arith.constant 0 : index
    %c0_12 = arith.constant 0 : index
    %14 = vector.load %arg2[%c1, %c0_11, %c0_12] : memref<4x128x128xf32, #tpu.memory_space<vmem>>, vector<1x128x128xf32>
    %15 = vector.shape_cast %14 : vector<1x128x128xf32> to vector<128x128xf32>
    %cst_13 = arith.constant dense<0.000000e+00> : vector<8x128xf32>
    %16 = tpu.matmul %13, %15, %cst_13 {dimension_numbers = #tpu.dot_dimension_numbers<[1], [0], [0], [1], [0, 0, 1, 1], [], []>} : vector<8x128xf32>, vector<128x128xf32>, vector<8x128xf32> -> vector<8x128xf32>
    %c1_14 = arith.constant 1 : index
    %c0_15 = arith.constant 0 : index
    %c0_16 = arith.constant 0 : index
    %17 = vector.load %arg3[%c1_14, %c0_15, %c0_16] : memref<4x1x128xf32, #tpu.memory_space<vmem>>, vector<1x1x128xf32>
    %18 = vector.shape_cast %17 : vector<1x1x128xf32> to vector<1x128xf32>
    %19 = vector.broadcast %18 : vector<1x128xf32> to vector<8x128xf32>
    %20 = arith.addf %16, %19 : vector<8x128xf32>
    %cst_17 = arith.constant 0.000000e+00 : f32
    %21 = vector.broadcast %cst_17 : f32 to vector<8x128xf32>
    %22 = arith.maximumf %20, %21 : vector<8x128xf32>
    %c2 = arith.constant 2 : index
    %c0_18 = arith.constant 0 : index
    %c0_19 = arith.constant 0 : index
    %23 = vector.load %arg2[%c2, %c0_18, %c0_19] : memref<4x128x128xf32, #tpu.memory_space<vmem>>, vector<1x128x128xf32>
    %24 = vector.shape_cast %23 : vector<1x128x128xf32> to vector<128x128xf32>
    %cst_20 = arith.constant dense<0.000000e+00> : vector<8x128xf32>
    %25 = tpu.matmul %22, %24, %cst_20 {dimension_numbers = #tpu.dot_dimension_numbers<[1], [0], [0], [1], [0, 0, 1, 1], [], []>} : vector<8x128xf32>, vector<128x128xf32>, vector<8x128xf32> -> vector<8x128xf32>
    %c2_21 = arith.constant 2 : index
    %c0_22 = arith.constant 0 : index
    %c0_23 = arith.constant 0 : index
    %26 = vector.load %arg3[%c2_21, %c0_22, %c0_23] : memref<4x1x128xf32, #tpu.memory_space<vmem>>, vector<1x1x128xf32>
    %27 = vector.shape_cast %26 : vector<1x1x128xf32> to vector<1x128xf32>
    %28 = vector.broadcast %27 : vector<1x128xf32> to vector<8x128xf32>
    %29 = arith.addf %25, %28 : vector<8x128xf32>
    %cst_24 = arith.constant 0.000000e+00 : f32
    %30 = vector.broadcast %cst_24 : f32 to vector<8x128xf32>
    %31 = arith.maximumf %29, %30 : vector<8x128xf32>
    %c3 = arith.constant 3 : index
    %c0_25 = arith.constant 0 : index
    %c0_26 = arith.constant 0 : index
    %32 = vector.load %arg2[%c3, %c0_25, %c0_26] : memref<4x128x128xf32, #tpu.memory_space<vmem>>, vector<1x128x128xf32>
    %33 = vector.shape_cast %32 : vector<1x128x128xf32> to vector<128x128xf32>
    %cst_27 = arith.constant dense<0.000000e+00> : vector<8x128xf32>
    %34 = tpu.matmul %31, %33, %cst_27 {dimension_numbers = #tpu.dot_dimension_numbers<[1], [0], [0], [1], [0, 0, 1, 1], [], []>} : vector<8x128xf32>, vector<128x128xf32>, vector<8x128xf32> -> vector<8x128xf32>
    %c3_28 = arith.constant 3 : index
    %c0_29 = arith.constant 0 : index
    %c0_30 = arith.constant 0 : index
    %35 = vector.load %arg3[%c3_28, %c0_29, %c0_30] : memref<4x1x128xf32, #tpu.memory_space<vmem>>, vector<1x1x128xf32>
    %36 = vector.shape_cast %35 : vector<1x1x128xf32> to vector<1x128xf32>
    %37 = vector.broadcast %36 : vector<1x128xf32> to vector<8x128xf32>
    %38 = arith.addf %34, %37 : vector<8x128xf32>
    %c0_31 = arith.constant 0 : index
    %c0_32 = arith.constant 0 : index
    %39 = vector.load %arg4[%c0_31, %c0_32] : memref<8x128xf32, #tpu.memory_space<vmem>>, vector<8x128xf32>
    tpu.vector_store %arg4[%c0_31, %c0_32], %38 {strides = array<i32>} : memref<8x128xf32, #tpu.memory_space<vmem>>, vector<8x128xf32>,
    return
  }
  func.func @transform_0(%arg0: i32) -> (i32, i32, i32) {
    %c0_i32 = arith.constant 0 : i32
    %c0_i32_0 = arith.constant 0 : i32
    %c0_i32_1 = arith.constant 0 : i32
    return %arg0, %c0_i32, %c0_i32_0 : i32, i32, i32
  }
  func.func @transform_1(%arg0: i32) -> (i32, i32, i32) {
    %c0_i32 = arith.constant 0 : i32
    %c0_i32_0 = arith.constant 0 : i32
    %c0_i32_1 = arith.constant 0 : i32
    %c0_i32_2 = arith.constant 0 : i32
    return %c0_i32, %c0_i32_0, %c0_i32_1 : i32, i32, i32
  }
  func.func @transform_2(%arg0: i32) -> (i32, i32, i32) {
    %c0_i32 = arith.constant 0 : i32
    %c0_i32_0 = arith.constant 0 : i32
    %c0_i32_1 = arith.constant 0 : i32
    %c0_i32_2 = arith.constant 0 : i32
    return %c0_i32, %c0_i32_0, %c0_i32_1 : i32, i32, i32
  }
  func.func @transform_3(%arg0: i32) -> (i32, i32) {
    %c0_i32 = arith.constant 0 : i32
    %c0_i32_0 = arith.constant 0 : i32
    return %arg0, %c0_i32 : i32, i32
  }
}

</mosaic_0001>

<bundles_post_ra>
// kernel: tpu_custom_call.1
= control target key start
LH: loop header
LB: loop body
LE: loop exit
PB: predicated region body
PF: predicated region fallthrough
CT: control target
= control target key end

     0   :  { %8 = vsyncpa [#allocation3], 0  ;;  %s1527_s0 = inlined_call_operand.hbm [shape: f32[16,8,32], index: 0, kind: input, shape index: {}]   ;;  %s1528_s1 = inlined_call_operand.hbm [shape: f32[4,128,128], index: 1, kind: input, shape index: {}]   ;;  %s1529_s2 = inlined_call_operand.vmem [shape: f32[4,1,128], index: 2, kind: input, shape index: {}]   ;;  %s1530_s3 = inlined_call_operand.hbm [shape: f32[16,128], index: 3, kind: output, shape index: {}]  }
   0x1   :  { %10 = vsyncpa [#allocation3 + $0x1], 0 }
   0x2   :  { %11 = vsyncpa [#allocation6], 0 }
   0x3   :  { %12 = vsyncpa [#allocation4], 0 }
   0x4   :  { %14 = vsyncpa [#allocation4 + $0x1], 0  ;;  %s1261_s12 = smov 0   ;;  %s1263_s13 = smov 0  }
   0x5   :  { %s1265_s14 = smov 0   ;;  %s1267_s15 = smov 0  }
   0x6 LB: > { %s1282_s16 = sadd.s32 4294967295, %s1231_s15   ;;  %s767_s17 = sadd.s32 4294967294, %s1231_s15   ;;  %s1231_s15 = sphi %s1267_s15, %s1550_s15   ;;  %s1227_s14 = sphi %s1265_s14, %s1549_s14   ;;  %s1223_s13 = sphi %s1263_s13, %s1548_s13   ;;  %s1219_s12 = sphi %s1261_s12, %s1547_s12  }
   0x7   : > { %p40_p0 = scmp.ne.s32.totalorder %s1223_s13, %s1219_s12  ;;  %p1531_p1 = scmp.eq.s32.totalorder %s1282_s16, 0 }
   0x8   : > { %p112_p3 = scmp.eq.s32.totalorder %s767_s17, 1  ;;  %p768_p5 = scmp.ge.s32.totalorder %s1231_s15, 1 }
   0x9   : > { %p1291_p4 = por %p1531_p1, %p40_p0  ;;  %p119_p7 = scmp.lt.s32.totalorder %s1231_s15, 3 }
   0xa   : > { %p1296_p6 = por %p112_p3, %p40_p0  ;;  %s1233_s21 = smov [#allocation5]  }
   0xb   : > { %s1534_s18 = scalar_select %p1291_p4, 1, 0 }
   0xc   : > { %s1535_s19 = scalar_select %p1296_p6, 1, 0 }
   0xd   : > { %p1301_p8 = pnand %p768_p5, %p119_p7  ;;  %s131_s22 = sshll.u32 %s1233_s21, 4  ;;  %s1305_s22 = int_to_ptr.vmem [resolvable:$true] %s131_s22 }
   0xe   : > { %s1317_s24 = sadd.s32 1, %s1231_s15   ;;  %s27_s25 = sadd.s32 1, %s1227_s14 }
   0xf   : > { %s1536_s20 = scalar_select %p1301_p8, 1, 0 }
  0x10   : > { %p1049_p9 = pneg %p1301_p8  ;;  %s24_s26 = ssub.s32 %s1231_s15, %s1317_s24 }
  0x11   : > { %s1103_s29 = scalar_lea.hbm %s1528_s1, 8192 }
  0x12   : > { %p1312_p11 = pnand %p1049_p9, %p1531_p1  ;;  %p1104_p12 = scmp.ne.s32.totalorder %s1528_s1, %s1103_s29 }
  0x13   : > { %p1110_p5 = scmp.lt.u32.totalorder %s1103_s29, %s1528_s1 }
  0x14   : > { %p1105_p13 = pneg %p1312_p11 }
  0x16   : > { %p1106_p0 = pnand %p1105_p13, %p1104_p12 }
  0x18   : > { %p1107_p3 = pneg %p1106_p0 }
  0x1a   : > { %p1112_p7 = pnand %p1110_p5, %p1107_p3 }
  0x1c   : > { %1115 = shalt.err (!%p1112_p7)
}
  0x1d   : > { %s1116_s7 = scalar_lea.vmem %s1305_s22, 8192  ;;  %p1124_p2 = scmp.lt.s32.totalorder %s1305_s22, %s1305_s22 }
  0x1e   : > { %p1117_p9 = scmp.ne.s32.totalorder %s1305_s22, %s1116_s7  ;;  %p1125_p6 = scmp.lt.s32.totalorder %s1116_s7, %s1116_s7 }
  0x20   : > { %p1119_p10 = pnand %p1117_p9, %p1105_p13  ;;  %p1126_p4 = por %p1125_p6, %p1124_p2 }
  0x22   : > { %p1120_p1 = pneg %p1119_p10 }
  0x24   : > { %p1127_p8 = pnand %p1126_p4, %p1120_p1 }
  0x26   : > { %1130 = shalt.err (!%p1127_p8)
}
  0x27   : > { %s1234_s8 = smov 128   ;;  %s1235_s9 = smov 8  }
  0x28   : > { %1052 = dma.hbm_to_vmem [thread:$0]  (!%p1312_p11), %s1528_s1, 8192, %s1305_s22, [#allocation6], %s1234_s8, %s1234_s8, %s1235_s9  }
  0x29   : > { %p25_p1 = scmp.eq.s32.totalorder %s24_s26, 0  ;;  %p34_p2 = scmp.ne.s32.totalorder %s1227_s14, %s1223_s13 }
  0x2a   : > { %p35_p4 = scmp.eq.s32.totalorder %s1231_s15, 0  ;;  %p1062_p6 = scmp.lt.s32.totalorder %s1231_s15, 2 }
  0x2b   : > { %s1351_s17 = scalar_select %p25_p1, %s1227_s14, %s27_s25  }
  0x2c   : > { %p36_p8 = por %p35_p4, %p34_p2  ;;  %p1538_p10 = scmp.eq.s32.totalorder %s1282_s16, 1 }
  0x2d   : > { %s148_s23 = sand.u32 1, %s1227_s14   ;;  %s790_s27 = sshll.u32 %s1231_s15, 10 }
  0x2e   : > { %p1355_p12 = por %p1538_p10, %p34_p2  ;;  %s771_s28 = sshll.u32 %s148_s23, 6 }
  0x2f   : > { %s1364_s4 = scalar_lea.hbm %s1527_s0, %s790_s27  ;;  %s152_s22 = scalar_lea.vmem [#allocation2], %s771_s28 }
  0x30   : > { %s159_s25 = sshll.u32 %s152_s22, 4  ;;  %p1366_p11 = pnand %p1062_p6, %p36_p8  ;;  %s1370_s25 = int_to_ptr.vmem [resolvable:$true] %s159_s25 }
  0x31   : > { %s1372_s5 = scalar_lea.sflag [#allocation3], %s148_s23  ;;  %s1131_s6 = scalar_lea.hbm %s1364_s4, 1024 }
  0x32   : > { %p1132_p13 = scmp.ne.s32.totalorder %s1364_s4, %s1131_s6  ;;  %p1133_p0 = pneg %p1366_p11 }
  0x33   : > { %s1136_s11 = scalar_lea.hbm %s1527_s0, 2048  ;;  %p1137_p7 = scmp.lt.u32.totalorder %s1364_s4, %s1527_s0 }
  0x34   : > { %p1134_p3 = pnand %p1133_p0, %p1132_p13  ;;  %p1138_p9 = scmp.lt.u32.totalorder %s1136_s11, %s1131_s6 }
  0x35   : > { %p1140_p2 = scmp.lt.u32.totalorder %s1131_s6, %s1364_s4 }
  0x36   : > { %p1135_p5 = pneg %p1134_p3  ;;  %p1139_p1 = por %p1138_p9, %p1137_p7 }
  0x38   : > { %p1141_p4 = por %p1140_p2, %p1139_p1 }
  0x3a   : > { %p1142_p6 = pnand %p1141_p4, %p1135_p5 }
  0x3c   : > { %1145 = shalt.err (!%p1142_p6)
}
  0x3d   : > { %s1146_s23 = scalar_lea.vmem %s1370_s25, 1024  ;;  %s1236_s29 = smov [#allocation2]  }
  0x3e   : > { %p1147_p8 = scmp.ne.s32.totalorder %s1370_s25, %s1146_s23  ;;  %s1151_s30 = sshll.u32 %s1236_s29, 4  ;;  %s1152_s30 = int_to_ptr.vmem [resolvable:$false] %s1151_s30 }
  0x3f   : > { %s1153_s22 = scalar_lea.vmem %s1152_s30, 2048  ;;  %p1154_p3 = scmp.lt.s32.totalorder %s1370_s25, %s1152_s30 }
  0x40   : > { %p1149_p10 = pnand %p1147_p8, %p1133_p0  ;;  %p1155_p7 = scmp.lt.s32.totalorder %s1153_s22, %s1146_s23 }
  0x42   : > { %p1150_p13 = pneg %p1149_p10  ;;  %p1156_p9 = por %p1155_p7, %p1154_p3 }
  0x44   : > { %p1157_p1 = pnand %p1156_p9, %p1150_p13 }
  0x46   : > { %1160 = shalt.err (!%p1157_p1)
}
  0x47   : > { %1056 = dma.hbm_to_vmem [thread:$0]  (!%p1366_p11), %s1364_s4, 1024, %s1370_s25, %s1372_s5, %s1234_s8, %s1234_s8, %s1235_s9  }
  0x48   : > { %p1541_p0 = scmp.ne.s32.totalorder %s1536_s20, 0 }
  0x49   : > { %s1406_s6 = sand.u32 (!%p1541_p0), 1, %s1223_s13   ;;  %p1542_p5 = scmp.ne.s32.totalorder (!%p1541_p0), %s1534_s18, 0 }
  0x4a   : > { %171 = sbr.rel (%p1541_p0) target bundleno = 986 (0x3da), region = 32  ;;  %s775_s7 = sshll.u32 (!%p1541_p0), %s1406_s6, 6 }
  0x4b   : > { %s174_s10 = scalar_lea.sflag (!%p1541_p0), [#allocation3], %s1406_s6  ;;  %s177_s11 = scalar_lea.vmem (!%p1541_p0), [#allocation2], %s775_s7 }
  0x51   : > { %1206 = dma.done.wait (%p1542_p5), %s174_s10, 1024  }
  0x52   : > { %1208 = vsyncadd (%p1542_p5), %s174_s10, 4294966272  ;;  %p1543_p2 = scmp.eq.s32.totalorder %s1282_s16, 0 }
  0x54   : > { %1210 = dma.done.wait (%p1543_p2), [#allocation6], 8192   ;;  %p1544_p11 = pmov %p1543_p2 }
  0x55   : > { %v1237_v0 = vmov 0.0|0.0   ;;  %vm1238_vm0 = vmmov 0   ;;  %v1239_v1 = vmov 0.0   ;;  %vm213_vm1 = vcmask 261120   ;;  %v279_v2 = vld [vmem:[#allocation5] sm:$0xff]  ;;  %v280_v3 = vld [vmem:[#allocation5 + $0x8] sm:$0xff] }
  0x56   : > { %1212 = vsyncadd (%p1544_p11), [#allocation6], 4294959104  ;;  %963 = vmatprep.subr.bf16.mxu0 %v1237_v0  ;;  %855 = vmatprep.mubr.msk.f32.mxu0 %vm1238_vm0, %v1239_v1  ;;  %v281_v4 = vld [vmem:[#allocation5 + $0x10] sm:$0xff]  ;;  %v964_v5 = vpack.c.bf16 %v280_v3, %v279_v2  ;;  %v282_v6 = vld [vmem:[#allocation5 + $0x18] sm:$0xff]  ;;  %vm298_vm2 = vcmask 1041409   ;;  %vm300_vm3 = vcmask 1042434  }
  0x57   : > { %969 = vmatprep.subr.bf16.mxu1 %v1237_v0  ;;  %890 = vmatprep.mubr.msk.f32.mxu1 %vm1238_vm0, %v1239_v1  ;;  %v205_v7 = vld [vmem:[%s177_s11] sm:$0xff]  ;;  %v206_v8 = vld [vmem:[%s177_s11 + $0x8] sm:$0xff]  ;;  %v207_v9 = vld [vmem:[%s177_s11 + $0x10] sm:$0xff]  ;;  %v967_v14 = vpack.c.bf16 %v282_v6, %v281_v4  ;;  %vm302_vm4 = vcmask 1043459   ;;  %vm304_vm5 = vcmask 1044484   ;;  %vm306_vm6 = vcmask 1045509  }
  0x58   : > { %v208_v10 = vld [vmem:[%s177_s11 + $0x18] sm:$0xff]  ;;  %v209_v11 = vld [vmem:[%s177_s11 + $0x20] sm:$0xff]  ;;  %v214_v12 = vsel %vm213_vm1, %v205_v7, 0.0  ;;  %v221_v13 = vsel %vm213_vm1, %v206_v8, 0.0  ;;  %965 = vmatpush3.bf16.msra.mxu0 %v964_v5  ;;  %v210_v15 = vld [vmem:[%s177_s11 + $0x28] sm:$0xff]  ;;  %v228_v20 = vsel %vm213_vm1, %v207_v9, 0.0 }
  0x59   : > { %v211_v16 = vld [vmem:[%s177_s11 + $0x30] sm:$0xff]  ;;  %v212_v17 = vld [vmem:[%s177_s11 + $0x38] sm:$0xff]  ;;  %v215_v18 = vrot.slane %v214_v12, 4  ;;  %v222_v19 = vrot.slane %v221_v13, 4  ;;  %966 = vmatprep.subr.bf16.mxu0 %v1237_v0  ;;  %v229_v21 = vrot.slane %v228_v20, 4  ;;  %v235_v22 = vsel %vm213_vm1, %v208_v10, 0.0 }
  0x5a   : > { %v242_v23 = vsel %vm213_vm1, %v209_v11, 0.0  ;;  %v249_v24 = vsel %vm213_vm1, %v210_v15, 0.0  ;;  %v236_v27 = vrot.slane %v235_v22, 4  ;;  %v256_v31 = vsel %vm213_vm1, %v211_v16, 0.0  ;;  %v386_v3 = vld [vmem:[#allocation5 + $0x80] sm:$0xff]  ;;  %v387_v4 = vld [vmem:[#allocation5 + $0x88] sm:$0xff] }
  0x5b   : > { %v216_v25 = vadd.f32 %v215_v18, %v214_v12  ;;  %v223_v26 = vadd.f32 %v222_v19, %v221_v13  ;;  %v243_v28 = vrot.slane %v242_v23, 4  ;;  %v230_v29 = vadd.f32 %v229_v21, %v228_v20  ;;  %v388_v13 = vld [vmem:[#allocation5 + $0x90] sm:$0xff]  ;;  %s777_s26 = sshll.u32 %s1406_s6, 3  ;;  %s787_s28 = sshll.u32 %s1282_s16, 7 }
  0x5c   : > { %v250_v30 = vrot.slane %v249_v24, 4  ;;  %v263_v32 = vsel %vm213_vm1, %v212_v17, 0.0  ;;  %968 = vmatpush3.bf16.msra.mxu0 %v967_v14  ;;  %v237_v35 = vadd.f32 %v236_v27, %v235_v22  ;;  %v257_v39 = vrot.slane %v256_v31, 4  ;;  %v389_v14 = vld [vmem:[#allocation5 + $0x98] sm:$0xff]  ;;  %s203_s23 = scalar_lea.vmem [#allocation7], %s777_s26  ;;  %s1483_s7 = scalar_lea.hbm %s1530_s3, %s787_s28 }
  0x5d   : > { %v217_v33 = vrot.slane %v216_v25, 2  ;;  %v224_v34 = vrot.slane %v223_v26, 2  ;;  %v244_v36 = vadd.f32 %v243_v28, %v242_v23  ;;  %v231_v37 = vrot.slane %v230_v29, 2  ;;  %993 = vmatprep.subr.bf16.mxu0 %v1237_v0  ;;  %v390_v28 = vld [vmem:[#allocation5 + $0xa0] sm:$0xff]  ;;  %s687_s29 = sshll.u32 %s203_s23, 4  ;;  %s674_s10 = scalar_lea.sflag [#allocation4], %s1406_s6  ;;  %s1485_s29 = int_to_ptr.vmem [resolvable:$true] %s687_s29 }
  0x5e   : > { %v251_v38 = vadd.f32 %v250_v30, %v249_v24  ;;  %v264_v40 = vrot.slane %v263_v32, 4  ;;  %v238_v43 = vrot.slane %v237_v35, 2  ;;  %v258_v47 = vadd.f32 %v257_v39, %v256_v31  ;;  %s1161_s11 = scalar_lea.vmem %s1485_s29, 128  ;;  %s1240_s16 = smov [#allocation7]  }
  0x5f   : > { %v218_v41 = vadd.f32 %v217_v33, %v216_v25  ;;  %v225_v42 = vadd.f32 %v224_v34, %v223_v26  ;;  %v245_v44 = vrot.slane %v244_v36, 2  ;;  %v232_v45 = vadd.f32 %v231_v37, %v230_v29  ;;  %v391_v29 = vld [vmem:[#allocation5 + $0xa8] sm:$0xff]  ;;  %v392_v34 = vld [vmem:[#allocation5 + $0xb0] sm:$0xff]  ;;  %v394_v37 = vld [vmem:[#allocation5 + $0xc0] sm:$0xff]  ;;  %p1162_p4 = scmp.ne.s32.totalorder %s1485_s29, %s1161_s11  ;;  %s1165_s18 = sshll.u32 %s1240_s16, 4  ;;  %s1166_s18 = int_to_ptr.vmem [resolvable:$false] %s1165_s18 }
  0x60   : > { %v252_v46 = vrot.slane %v251_v38, 2  ;;  %v265_v48 = vadd.f32 %v264_v40, %v263_v32  ;;  %v239_v51 = vadd.f32 %v238_v43, %v237_v35  ;;  %v259_v55 = vrot.slane %v258_v47, 2  ;;  %v393_v35 = vld [vmem:[#allocation5 + $0xb8] sm:$0xff]  ;;  %v396_v40 = vld [vmem:[#allocation5 + $0xd0] sm:$0xff]  ;;  %v398_v43 = vld [vmem:[#allocation5 + $0xe0] sm:$0xff]  ;;  %s1167_s20 = scalar_lea.vmem %s1166_s18, 256  ;;  %p1168_p10 = scmp.lt.s32.totalorder %s1485_s29, %s1166_s18 }
  0x61   : > { %v219_v49 = vrot.slane %v218_v41, 1  ;;  %v226_v50 = vrot.slane %v225_v42, 1  ;;  %v246_v52 = vadd.f32 %v245_v44, %v244_v36  ;;  %v233_v53 = vrot.slane %v232_v45, 1  ;;  %v399_v44 = vld [vmem:[#allocation5 + $0xe8] sm:$0xff]  ;;  %p1163_p6 = pnand %p1162_p4, %p1355_p12  ;;  %p1169_p13 = scmp.lt.s32.totalorder %s1167_s20, %s1161_s11 }
  0x62   : > { %v253_v54 = vadd.f32 %v252_v46, %v251_v38  ;;  %v266_v56 = vrot.slane %v265_v48, 2  ;;  %v240_v59 = vrot.slane %v239_v51, 1  ;;  %v260_v63 = vadd.f32 %v259_v55, %v258_v47  ;;  %v395_v38 = vld [vmem:[#allocation5 + $0xc8] sm:$0xff]  ;;  %v400_v46 = vld [vmem:[#allocation5 + $0xf0] sm:$0xff]  ;;  %v401_v47 = vld [vmem:[#allocation5 + $0xf8] sm:$0xff] }
  0x63   : > { %v220_v57 = vadd.f32 %v219_v49, %v218_v41  ;;  %v227_v58 = vadd.f32 %v226_v50, %v225_v42  ;;  %v247_v60 = vrot.slane %v246_v52, 1  ;;  %v234_v61 = vadd.f32 %v233_v53, %v232_v45  ;;  %v397_v41 = vld [vmem:[#allocation5 + $0xd8] sm:$0xff]  ;;  %v482_v49 = vld [vmem:[#allocation5 + $0x100] sm:$0xff]  ;;  %v483_v50 = vld [vmem:[#allocation5 + $0x108] sm:$0xff]  ;;  %p1164_p8 = pneg %p1163_p6  ;;  %p1170_p3 = por %p1169_p13, %p1168_p10 }
  0x64   : > { %v254_v62 = vrot.slane %v253_v54, 1  ;;  %v267_v2 = vadd.f32 %v266_v56, %v265_v48  ;;  %v241_v5 = vadd.f32 %v240_v59, %v239_v51  ;;  %v261_v10 = vrot.slane %v260_v63, 1  ;;  %v484_v51 = vld [vmem:[#allocation5 + $0x110] sm:$0xff]  ;;  %v485_v53 = vld [vmem:[#allocation5 + $0x118] sm:$0xff]  ;;  %v486_v55 = vld [vmem:[#allocation5 + $0x120] sm:$0xff] }
  0x65   : > { %v248_v6 = vadd.f32 %v247_v60, %v246_v52  ;;  %v271_v7 = vmul.f32 0.125, %v220_v57  ;;  %v272_v8 = vmul.f32 0.125, %v227_v58  ;;  %v273_v12 = vmul.f32 0.125, %v234_v61  ;;  %v487_v56 = vld [vmem:[#allocation5 + $0x128] sm:$0xff]  ;;  %v488_v58 = vld [vmem:[#allocation5 + $0x130] sm:$0xff]  ;;  %v489_v59 = vld [vmem:[#allocation5 + $0x138] sm:$0xff]  ;;  %p1171_p7 = pnand %p1170_p3, %p1164_p8 }
  0x66   : > { %v255_v9 = vadd.f32 %v254_v62, %v253_v54  ;;  %v268_v11 = vrot.slane %v267_v2, 1  ;;  %v274_v15 = vmul.f32 0.125, %v241_v5  ;;  %v970_v18 = vpack.c.bf16 %v387_v4, %v386_v3  ;;  %v490_v61 = vld [vmem:[#allocation5 + $0x140] sm:$0xff]  ;;  %v491_v62 = vld [vmem:[#allocation5 + $0x148] sm:$0xff]  ;;  %v493_v3 = vld [vmem:[#allocation5 + $0x158] sm:$0xff] }
  0x67   : > { %v275_v16 = vmul.f32 0.125, %v248_v6  ;;  %v299_v17 = vsel %vm298_vm2, %v272_v8, %v271_v7  ;;  %v262_v19 = vadd.f32 %v261_v10, %v260_v63  ;;  %vm308_vm7 = vcmask 1046534   ;;  %v494_v5 = vld [vmem:[#allocation5 + $0x160] sm:$0xff]  ;;  %v495_v6 = vld [vmem:[#allocation5 + $0x168] sm:$0xff] }
  0x68   : > { %v269_v20 = vadd.f32 %v268_v11, %v267_v2  ;;  %v276_v21 = vmul.f32 0.125, %v255_v9  ;;  %v301_v22 = vsel %vm300_vm3, %v273_v12, %v299_v17  ;;  %971 = vmatpush3.bf16.msra.mxu1 %v970_v18  ;;  %v973_v24 = vpack.c.bf16 %v389_v14, %v388_v13  ;;  %v492_v2 = vld [vmem:[#allocation5 + $0x150] sm:$0xff]  ;;  %v778_v8 = vld [vmem:[%s1529_s2] ss:$0 sm:$0xff]  ;;  %v497_v14 = vld [vmem:[#allocation5 + $0x178] sm:$0xff] }
  0x69   : > { %v303_v23 = vsel %vm302_vm4, %v274_v15, %v301_v22  ;;  %v277_v25 = vmul.f32 0.125, %v262_v19  ;;  %vm310_vm8 = vcmask 1047559   ;;  %972 = vmatprep.subr.bf16.mxu1 %v1237_v0  ;;  %v976_v33 = vpack.c.bf16 %v391_v29, %v390_v28  ;;  %v496_v13 = vld [vmem:[#allocation5 + $0x170] sm:$0xff]  ;;  %v579_v17 = vld [vmem:[#allocation5 + $0x188] sm:$0xff]  ;;  %v582_v22 = vld [vmem:[#allocation5 + $0x1a0] sm:$0xff] }
  0x6a   : > { %v278_v26 = vmul.f32 0.125, %v269_v20  ;;  %v305_v27 = vsel %vm304_vm5, %v275_v16, %v303_v23  ;;  %v979_v36 = vpack.c.bf16 %v393_v35, %v392_v34  ;;  %v982_v39 = vpack.c.bf16 %v395_v38, %v394_v37  ;;  %v578_v16 = vld [vmem:[#allocation5 + $0x180] sm:$0xff]  ;;  %v580_v18 = vld [vmem:[#allocation5 + $0x190] sm:$0xff]  ;;  %v581_v20 = vld [vmem:[#allocation5 + $0x198] sm:$0xff] }
  0x6b   : > { %v307_v30 = vsel %vm306_vm6, %v276_v21, %v305_v27  ;;  %v985_v42 = vpack.c.bf16 %v397_v41, %v396_v40  ;;  %v988_v45 = vpack.c.bf16 %v399_v44, %v398_v43  ;;  %v991_v48 = vpack.c.bf16 %v401_v47, %v400_v46  ;;  %v583_v23 = vld [vmem:[#allocation5 + $0x1a8] sm:$0xff]  ;;  %v586_v27 = vld [vmem:[#allocation5 + $0x1c0] sm:$0xff]  ;;  %v592_v41 = vld [vmem:[#allocation5 + $0x1f0] sm:$0xff] }
  0x6c   : > { %v309_v31 = vsel %vm308_vm7, %v277_v25, %v307_v30  ;;  %974 = vmatpush3.bf16.msra.mxu1 %v973_v24  ;;  %v994_v52 = vpack.c.bf16 %v483_v50, %v482_v49  ;;  %v997_v54 = vpack.c.bf16 %v485_v53, %v484_v51  ;;  %v1000_v57 = vpack.c.bf16 %v487_v56, %v486_v55  ;;  %v585_v25 = vld [vmem:[#allocation5 + $0x1b8] sm:$0xff]  ;;  %v587_v28 = vld [vmem:[#allocation5 + $0x1c8] sm:$0xff]  ;;  %v588_v30 = vld [vmem:[#allocation5 + $0x1d0] sm:$0xff] }
  0x6d   : > { %v311_v32 = vsel %vm310_vm8, %v278_v26, %v309_v31  ;;  %975 = vmatprep.subr.bf16.mxu1 %v1237_v0  ;;  %v1003_v60 = vpack.c.bf16 %v489_v59, %v488_v58  ;;  %v1006_v63 = vpack.c.bf16 %v491_v62, %v490_v61  ;;  %v1009_v4 = vpack.c.bf16 %v493_v3, %v492_v2  ;;  %v589_v31 = vld [vmem:[#allocation5 + $0x1d8] sm:$0xff]  ;;  %v591_v34 = vld [vmem:[#allocation5 + $0x1e8] sm:$0xff]  ;;  %v783_v44 = vld [vmem:[%s1529_s2 + $0x2] ss:$0 sm:$0xff] }
  0x6e   : > { %856 = vmatmul.mubr.msk.f32.vlgmr.msra.gmra.mrb[0].mxu0 %vm213_vm1, %v311_v32  ;;  %v1012_v7 = vpack.c.bf16 %v495_v6, %v494_v5  ;;  %v1015_v15 = vpack.c.bf16 %v497_v14, %v496_v13  ;;  %v1018_v19 = vpack.c.bf16 %v579_v17, %v578_v16  ;;  %v1021_v21 = vpack.c.bf16 %v581_v20, %v580_v18 }
  0x6f   : > { %925 = vmatprep.mubr.msk.f32.mxu0 %vm1238_vm0, %v1239_v1  ;;  %995 = vmatpush3.bf16.msra.mxu0 %v994_v52  ;;  %v1024_v24 = vpack.c.bf16 %v583_v23, %v582_v22  ;;  %v1030_v29 = vpack.c.bf16 %v587_v28, %v586_v27  ;;  %v1033_v32 = vpack.c.bf16 %v589_v31, %v588_v30 }
  0x70   : > { %977 = vmatpush3.bf16.msra.mxu1 %v976_v33  ;;  %996 = vmatprep.subr.bf16.mxu0 %v1237_v0  ;;  %v590_v33 = vld [vmem:[#allocation5 + $0x1e0] sm:$0xff] }
  0x71   : > { %978 = vmatprep.subr.bf16.mxu1 %v1237_v0  ;;  %v1036_v35 = vpack.c.bf16 %v591_v34, %v590_v33 }
  0x73   : > { %998 = vmatpush3.bf16.msra.mxu0 %v997_v54 }
  0x74   : > { %980 = vmatpush3.bf16.msra.mxu1 %v979_v36  ;;  %999 = vmatprep.subr.bf16.mxu0 %v1237_v0  ;;  %v781_v36 = vld [vmem:[%s1529_s2 + $0x1] ss:$0 sm:$0xff] }
  0x75   : > { %981 = vmatprep.subr.bf16.mxu1 %v1237_v0 }
  0x77   : > { %1001 = vmatpush3.bf16.msra.mxu0 %v1000_v57 }
  0x78   : > { %983 = vmatpush3.bf16.msra.mxu1 %v982_v39  ;;  %1002 = vmatprep.subr.bf16.mxu0 %v1237_v0 }
  0x79   : > { %984 = vmatprep.subr.bf16.mxu1 %v1237_v0 }
  0x7b   : > { %1004 = vmatpush3.bf16.msra.mxu0 %v1003_v60 }
  0x7c   : > { %986 = vmatpush3.bf16.msra.mxu1 %v985_v42  ;;  %1005 = vmatprep.subr.bf16.mxu0 %v1237_v0  ;;  %v593_v42 = vld [vmem:[#allocation5 + $0x1f8] sm:$0xff] }
  0x7d   : > { %987 = vmatprep.subr.bf16.mxu1 %v1237_v0  ;;  %v1039_v43 = vpack.c.bf16 %v593_v42, %v592_v41 }
  0x7f   : > { %1007 = vmatpush3.bf16.msra.mxu0 %v1006_v63 }
  0x80   : > { %989 = vmatpush3.bf16.msra.mxu1 %v988_v45  ;;  %1008 = vmatprep.subr.bf16.mxu0 %v1237_v0 }
  0x81   : > { %990 = vmatprep.subr.bf16.mxu1 %v1237_v0 }
  0x83   : > { %1010 = vmatpush3.bf16.msra.mxu0 %v1009_v4 }
  0x84   : > { %992 = vmatpush3.bf16.msra.mxu1 %v991_v48  ;;  %1011 = vmatprep.subr.bf16.mxu0 %v1237_v0  ;;  %v785_v48 = vld [vmem:[%s1529_s2 + $0x3] ss:$0 sm:$0xff] }
  0x85   : > { %1017 = vmatprep.subr.bf16.mxu1 %v1237_v0 }
  0x87   : > { %1013 = vmatpush3.bf16.msra.mxu0 %v1012_v7 }
  0x88   : > { %1014 = vmatprep.subr.bf16.mxu0 %v1237_v0 }
  0x8b   : > { %1016 = vmatpush3.bf16.msra.mxu0 %v1015_v15 }
 0x141   : > { %v380_v9 = vpop.f32.mrb[0].mxu0 }
 0x142   : > { %v381_v10 = vadd.f32 %v778_v8, %v380_v9  ;;  %v857_v11 = vpop.f32.mrb[1].mxu0 }
 0x144   : > { %v384_v12 = vmax.f32 %v381_v10, 0.0 }
 0x146   : > { %891 = vmatmul.mubr.f32.vlgmr.msra.gmra.mrb[0].mxu1 %v384_v12 }
 0x147   : > { %960 = vmatprep.mubr.msk.f32.mxu1 %vm1238_vm0, %v1239_v1  ;;  %1019 = vmatpush3.bf16.msra.mxu1 %v1018_v19  ;;  %v584_v1 = vld [vmem:[#allocation5 + $0x1b0] sm:$0xff] }
 0x148   : > { %1020 = vmatprep.subr.bf16.mxu1 %v1237_v0  ;;  %v1027_v26 = vpack.c.bf16 %v585_v25, %v584_v1 }
 0x14b   : > { %1022 = vmatpush3.bf16.msra.mxu1 %v1021_v21 }
 0x14c   : > { %1023 = vmatprep.subr.bf16.mxu1 %v1237_v0 }
 0x14f   : > { %1025 = vmatpush3.bf16.msra.mxu1 %v1024_v24 }
 0x150   : > { %1026 = vmatprep.subr.bf16.mxu1 %v1237_v0 }
 0x153   : > { %1028 = vmatpush3.bf16.msra.mxu1 %v1027_v26 }
 0x154   : > { %1029 = vmatprep.subr.bf16.mxu1 %v1237_v0 }
 0x157   : > { %1031 = vmatpush3.bf16.msra.mxu1 %v1030_v29 }
 0x158   : > { %1032 = vmatprep.subr.bf16.mxu1 %v1237_v0 }
 0x15b   : > { %1034 = vmatpush3.bf16.msra.mxu1 %v1033_v32 }
 0x15c   : > { %1035 = vmatprep.subr.bf16.mxu1 %v1237_v0 }
 0x15f   : > { %1037 = vmatpush3.bf16.msra.mxu1 %v1036_v35 }
 0x160   : > { %1038 = vmatprep.subr.bf16.mxu1 %v1237_v0 }
 0x163   : > { %1040 = vmatpush3.bf16.msra.mxu1 %v1039_v43 }
 0x219   : > { %v476_v37 = vpop.f32.mrb[0].mxu1 }
 0x21a   : > { %v477_v38 = vadd.f32 %v781_v36, %v476_v37  ;;  %v892_v39 = vpop.f32.mrb[1].mxu1 }
 0x21c   : > { %v480_v40 = vmax.f32 %v477_v38, 0.0 }
 0x21e   : > { %926 = vmatmul.mubr.f32.vlgmr.msra.gmra.mrb[2].mxu0 %v480_v40 }
 0x2f1   : > { %v572_v0 = vpop.f32.mrb[2].mxu0 }
 0x2f2   : > { %v573_v45 = vadd.f32 %v783_v44, %v572_v0  ;;  %v927_v46 = vpop.f32.mrb[3].mxu0 }
 0x2f4   : > { %v576_v47 = vmax.f32 %v573_v45, 0.0 }
 0x2f6   : > { %961 = vmatmul.mubr.f32.vlgmr.msra.gmra.mrb[2].mxu1 %v576_v47 }
 0x3c9   : > { %v668_v49 = vpop.f32.mrb[2].mxu1 }
 0x3ca   : > { %v669_v50 = vadd.f32 %v785_v48, %v668_v49  ;;  %v962_v51 = vpop.f32.mrb[3].mxu1 }
 0x3cc   : > { %672 = vst [vmem:[%s203_s23] sm:$0xff] %v669_v50 }
 0x3cd   : > { %1174 = shalt.err (!%p1171_p7)
}
 0x3ce   : > { %s1175_s6 = scalar_lea.hbm %s1483_s7, 128  ;;  %s1179_s4 = scalar_lea.hbm %s1530_s3, 256 }
 0x3cf   : > { %p1176_p9 = scmp.ne.s32.totalorder %s1483_s7, %s1175_s6  ;;  %p1180_p5 = scmp.lt.u32.totalorder %s1483_s7, %s1530_s3 }
 0x3d0   : > { %p1181_p2 = scmp.lt.u32.totalorder %s1179_s4, %s1175_s6  ;;  %p1183_p4 = scmp.lt.u32.totalorder %s1175_s6, %s1483_s7 }
 0x3d1   : > { %p1177_p1 = pnand %p1176_p9, %p1355_p12 }
 0x3d2   : > { %p1182_p11 = por %p1181_p2, %p1180_p5 }
 0x3d3   : > { %p1178_p0 = pneg %p1177_p1 }
 0x3d4   : > { %p1184_p6 = por %p1183_p4, %p1182_p11 }
 0x3d6   : > { %p1185_p8 = pnand %p1184_p6, %p1178_p0 }
 0x3d8   : > { %1188 = shalt.err (!%p1185_p8)
}
 0x3d9   : > { %1047 = dma.vmem_to_hbm [thread:$0]  (%p1355_p12), %s1485_s29, 128, %s1483_s7, %s674_s10  }
 0x3da PF: > { %s699_s5 = sand.u32 1, %s1219_s12   ;;  %p1545_p10 = scmp.ne.s32.totalorder %s1535_s19, 0 }
 0x3db   : > { %p1546_p13 = scmp.ge.s32.totalorder %s1231_s15, 2  ;;  %s700_s27 = scalar_lea.sflag [#allocation4], %s699_s5 }
 0x3dd   : > { %p1058_p3 = pnand %p1546_p13, %p1545_p10 }
 0x3df   : > { %1214 = dma.done.wait (!%p1058_p3), %s700_s27, 128  }
 0x3e0   : > { %1216 = vsyncadd (!%p1058_p3), %s700_s27, 4294967168  ;;  %p17_p7 = scmp.ge.s32.totalorder %s1317_s24, 4   ;;  %s1547_s12 = smov %s1223_s13 }
 0x3e1   : > { %s1548_s13 = smov %s1227_s14  ;;  %s1549_s14 = smov %s1351_s17 }
 0x3e2   : > { %s1550_s15 = smov %s1317_s24  ;;  %19 = sbr.rel (!%p17_p7) target bundleno = 6 (0x6), region = 87 }
 0x3e9   :  { %705 = vsyncpa [#allocation3], 1 }
 0x3ea   :  { %707 = vsyncpa [#allocation3 + $0x1], 1 }
 0x3eb   :  { %708 = vsyncpa [#allocation6], 1 }
 0x3ec   :  { %709 = vsyncpa [#allocation4], 1 }
 0x3ed   :  { %711 = vsyncpa [#allocation4 + $0x1], 1 }

</bundles_post_ra>
